<compile_context>
chip_gen: v5e
topology: v5e:2x2
jax: 0.10.0
libtpu: 0.0.40
codegen_flags: <defaults>
</compile_context>

<pallas_src>
import jax
import jax.numpy as jnp
from jax.experimental import pallas as pl
from jax.experimental.pallas import tpu as pltpu


# ----------------------------------------------------------------------------
# Weight packing (done once, outside the kernels).
# ----------------------------------------------------------------------------
def pack_cell_params(params):
    """-> (Wcat [2D,4D], b4 [1,4D]) for the fused single-step cell kernel."""
    Wu, Uu, bu, Wr, Ur, br, Wh, Uh, bh, _Wa = params
    zero_w = jnp.zeros_like(Wh)
    zero_b = jnp.zeros_like(bh)
    # Column blocks: [ u-gate | r-gate | x@Wh(+bh) | h1@Uh ]
    top = jnp.concatenate([Wu, Wr, Wh, zero_w], axis=1)   # rows for x
    bot = jnp.concatenate([Uu, Ur, zero_w, Uh], axis=1)   # rows for h1
    Wcat = jnp.concatenate([top, bot], axis=0)            # [2D, 4D]
    b4 = jnp.concatenate([bu, br, bh, zero_b], axis=1)    # [1, 4D]
    return Wcat, b4


def pack_seq_params(params):
    """-> (Wx3 [D,3D], U3 [D,3D], b3 [1,3D]) for the fused sequence kernel."""
    Wu, Uu, bu, Wr, Ur, br, Wh, Uh, bh, _Wa = params
    Wx3 = jnp.concatenate([Wu, Wr, Wh], axis=1)   # x-projection (hoisted)
    U3 = jnp.concatenate([Uu, Ur, Uh], axis=1)    # h-projection (serial path)
    b3 = jnp.concatenate([bu, br, bh], axis=1)    # folded into x-projection
    return Wx3, U3, b3


# ----------------------------------------------------------------------------
# Single-step AUGRU cell kernel (matches the PyTorch module's forward()).
# One MXU matmul: [x | h1] @ Wcat + b4, one sigmoid over the combined u|r slab.
# ----------------------------------------------------------------------------
def augru_cell_kernel(x_ref, h1_ref, wcat_ref, b_ref, out_ref):
    x = x_ref[...]
    h1 = h1_ref[...]
    D = h1.shape[1]

    xh = jnp.concatenate([x, h1], axis=1)                       # [B, 2D]
    z = (jnp.dot(xh, wcat_ref[...], preferred_element_type=jnp.float32)
         + b_ref[...])                                          # [B, 4D]

    s = jax.nn.sigmoid(z[:, 0:2 * D])                           # u|r in one EUP op
    u = s[:, 0:D]
    r = s[:, D:2 * D]
    h_hat = jnp.tanh(z[:, 2 * D:3 * D] + r * z[:, 3 * D:4 * D])

    # attention softmax over a singleton dim == 1.0 exactly, so u_hat == u.
    out_ref[...] = (1.0 - u) * h1 + u * h_hat


def augru_cell(x, h_1, item, packed_cell):
    """Single AUGRU step. `item` accepted for API fidelity but unused: the
    reference attention is softmax over a singleton axis (== 1.0 exactly)."""
    del item
    B, in_dim = x.shape
    _, H = h_1.shape
    assert in_dim == H, "AUGRU_Cell requires in_dim == hidden_dim"
    Wcat, b4 = packed_cell
    vmem = pl.BlockSpec(memory_space=pltpu.MemorySpace.VMEM)
    return pl.pallas_call(
        augru_cell_kernel,
        out_shape=jax.ShapeDtypeStruct((B, H), jnp.float32),
        in_specs=[vmem] * 4,
        out_specs=vmem,
    )(x, h_1, Wcat, b4)


# ----------------------------------------------------------------------------
# Sequence-fused kernel: whole recurrence in ONE pallas_call, no grid.
#   prologue : xz = x_flat @ [Wu|Wr|Wh] + [bu|br|bh]   (one M=T*B matmul)
#   per step : hz = h @ [Uu|Ur|Uh]; gates; h update; store into resident out.
# ----------------------------------------------------------------------------
def augru_seq_kernel(x_ref, h0_ref, wx_ref, u_ref, b_ref, out_ref, xz_sc):
    B, D = h0_ref.shape
    T = x_ref.shape[0] // B

    # Hoisted x-projection for all timesteps: single [T*B, D] x [D, 3D] MXU op,
    # bias folded once (no per-step bias broadcast).
    xz_sc[...] = (jnp.dot(x_ref[...], wx_ref[...],
                          preferred_element_type=jnp.float32) + b_ref[...])

    U = u_ref[...]  # resident [D, 3D]

    def step(t, h):
        off = pl.multiple_of(t * B, B)
        xz = xz_sc[pl.ds(off, B), :]                            # [B, 3D]
        hz = jnp.dot(h, U, preferred_element_type=jnp.float32)  # [B, 3D]

        s = jax.nn.sigmoid(xz[:, 0:2 * D] + hz[:, 0:2 * D])     # u|r fused
        u = s[:, 0:D]
        r = s[:, D:2 * D]
        h_hat = jnp.tanh(xz[:, 2 * D:3 * D] + r * hz[:, 2 * D:3 * D])

        h_new = (1.0 - u) * h + u * h_hat                       # u_hat == u (exact)
        out_ref[pl.ds(off, B), :] = h_new                       # resident output
        return h_new

    # Fully unrolled in-kernel recurrence (T is small/static): no per-step
    # grid/pipeline overhead, full LLO scheduling visibility across steps.
    jax.lax.fori_loop(0, T, step, h0_ref[...], unroll=True)


def augru_sequence(x_seq, h_0, item, packed_seq):
    """Run the AUGRU cell over x_seq [T, B, D] in a single kernel invocation."""
    del item
    T, B, D = x_seq.shape
    assert h_0.shape == (B, D)
    Wx3, U3, b3 = packed_seq
    # Contiguous merge of leading dims (layout no-op); gives one M=T*B matmul
    # in the kernel prologue and a single lane/sublane-dense output slab.
    x_flat = x_seq.reshape(T * B, D)
    vmem = pl.BlockSpec(memory_space=pltpu.MemorySpace.VMEM)
    # TODO(synk): if T*B or D grows beyond VMEM, chunk T with a grid axis
    # (block (Tc*B, D), inner unrolled loop over Tc) instead of full residency.
    out_flat = pl.pallas_call(
        augru_seq_kernel,
        out_shape=jax.ShapeDtypeStruct((T * B, D), jnp.float32),
        in_specs=[vmem] * 5,
        out_specs=vmem,
        scratch_shapes=[pltpu.VMEM((T * B, 3 * D), jnp.float32)],
    )(x_flat, h_0, Wx3, U3, b3)
    return out_flat.reshape(T, B, D)


# ----------------------------------------------------------------------------
# Deterministic parameter init (xavier_uniform, like torch.nn.init)
# ----------------------------------------------------------------------------
def xavier_uniform(key, shape):
    fan_in, fan_out = shape[0], shape[1]
    bound = jnp.sqrt(6.0 / (fan_in + fan_out))
    return jax.random.uniform(key, shape, jnp.float32, -bound, bound)


def make_params(key, in_dim, hidden_dim):
    keys = jax.random.split(key, 10)
    Wu = xavier_uniform(keys[0], (in_dim, hidden_dim))
    Uu = xavier_uniform(keys[1], (in_dim, hidden_dim))
    bu = xavier_uniform(keys[2], (1, hidden_dim))
    Wr = xavier_uniform(keys[3], (in_dim, hidden_dim))
    Ur = xavier_uniform(keys[4], (in_dim, hidden_dim))
    br = xavier_uniform(keys[5], (1, hidden_dim))
    Wh = xavier_uniform(keys[6], (hidden_dim, hidden_dim))
    Uh = xavier_uniform(keys[7], (hidden_dim, hidden_dim))
    bh = xavier_uniform(keys[8], (1, hidden_dim))
    Wa = xavier_uniform(keys[9], (hidden_dim, in_dim))
    return (Wu, Uu, bu, Wr, Ur, br, Wh, Uh, bh, Wa)


# ----------------------------------------------------------------------------
# Pure-JAX references (include the FULL attention branch) for correctness.
# ----------------------------------------------------------------------------
def augru_cell_ref(x, h_1, item, params):
    Wu, Uu, bu, Wr, Ur, br, Wh, Uh, bh, Wa = params
    u = jax.nn.sigmoid(x @ Wu + h_1 @ Uu + bu)
    r = jax.nn.sigmoid(x @ Wr + h_1 @ Ur + br)
    h_hat = jnp.tanh(x @ Wh + r * (h_1 @ Uh) + bh)
    hW = x @ Wa
    hWi = jnp.sum(hW * item, axis=1, keepdims=True)
    a = jax.nn.softmax(hWi, axis=1)          # singleton dim -> exactly ones
    u_hat = a * u
    return (1.0 - u_hat) * h_1 + u_hat * h_hat


def augru_seq_ref(x_seq, h_0, item, params):
    def step(h, x):
        h_new = augru_cell_ref(x, h, item, params)
        return h_new, h_new
    _, hs = jax.lax.scan(step, h_0, x_seq)
    return hs


if __name__ == "__main__":
    B = 8
    in_dim = hidden_dim = 32     # module requires in_dim == hidden_dim
    T = 16                       # DIEN-style sequence length for the fused kernel

    key = jax.random.PRNGKey(0)
    k_x, k_h, k_item, k_params, k_seq = jax.random.split(key, 5)

    x = jax.random.normal(k_x, (B, in_dim), jnp.float32)
    h_1 = jax.random.normal(k_h, (B, hidden_dim), jnp.float32)
    item = jax.random.normal(k_item, (B, in_dim), jnp.float32)
    x_seq = jax.random.normal(k_seq, (T, B, in_dim), jnp.float32)

    params = make_params(k_params, in_dim, hidden_dim)
    packed_cell = pack_cell_params(params)
    packed_seq = pack_seq_params(params)

    # --- single-step cell (the module's forward) ---
    out = augru_cell(x, h_1, item, packed_cell)
    out = jax.block_until_ready(out)
    ref = augru_cell_ref(x, h_1, item, params)
    assert out.shape == (B, hidden_dim)
    assert jnp.allclose(out, ref, atol=1e-5, rtol=1e-5), "cell mismatch vs reference"

    # --- sequence-fused kernel (single pallas_call, no grid) ---
    out_seq = augru_sequence(x_seq, h_1, item, packed_seq)
    out_seq = jax.block_until_ready(out_seq)
    ref_seq = augru_seq_ref(x_seq, h_1, item, params)
    assert out_seq.shape == (T, B, hidden_dim)
    assert jnp.allclose(out_seq, ref_seq, atol=1e-4, rtol=1e-4), "sequence mismatch vs reference"

    print("KERNEL_OK")
</pallas_src>

<mosaic_0001>
module attributes {stable_mosaic.version = 11 : i64} {
  func.func @augru_cell_kernel(%arg0: memref<8x32xf32, #tpu.memory_space<vmem>>, %arg1: memref<8x32xf32, #tpu.memory_space<vmem>>, %arg2: memref<64x128xf32, #tpu.memory_space<vmem>>, %arg3: memref<1x128xf32, #tpu.memory_space<vmem>>, %arg4: memref<8x32xf32, #tpu.memory_space<vmem>>) attributes {dimension_semantics = [], scalar_prefetch = 0 : i64, scratch_operands = 0 : i64, tpu.core_type = #tpu.core_type<tc>} {
    %c0 = arith.constant 0 : index
    %c0_0 = arith.constant 0 : index
    %0 = vector.load %arg0[%c0, %c0_0] : memref<8x32xf32, #tpu.memory_space<vmem>>, vector<8x32xf32>
    %c0_1 = arith.constant 0 : index
    %c0_2 = arith.constant 0 : index
    %1 = vector.load %arg1[%c0_1, %c0_2] : memref<8x32xf32, #tpu.memory_space<vmem>>, vector<8x32xf32>
    %2 = tpu.concatenate %0, %1 in 1 : vector<8x32xf32>, vector<8x32xf32> -> vector<8x64xf32>
    %c0_3 = arith.constant 0 : index
    %c0_4 = arith.constant 0 : index
    %3 = vector.load %arg2[%c0_3, %c0_4] : memref<64x128xf32, #tpu.memory_space<vmem>>, vector<64x128xf32>
    %cst = arith.constant dense<0.000000e+00> : vector<8x128xf32>
    %4 = tpu.matmul %2, %3, %cst {dimension_numbers = #tpu.dot_dimension_numbers<[1], [0], [0], [1], [0, 0, 1, 1], [], []>} : vector<8x64xf32>, vector<64x128xf32>, vector<8x128xf32> -> vector<8x128xf32>
    %c0_5 = arith.constant 0 : index
    %c0_6 = arith.constant 0 : index
    %5 = vector.load %arg3[%c0_5, %c0_6] : memref<1x128xf32, #tpu.memory_space<vmem>>, vector<1x128xf32>
    %6 = vector.broadcast %5 : vector<1x128xf32> to vector<8x128xf32>
    %7 = arith.addf %4, %6 : vector<8x128xf32>
    %8 = vector.extract_strided_slice %7 {offsets = [0, 0], sizes = [8, 64], strides = [1, 1]} : vector<8x128xf32> to vector<8x64xf32>
    %9 = arith.negf %8 : vector<8x64xf32>
    %10 = math.exp %9 : vector<8x64xf32>
    %cst_7 = arith.constant 1.000000e+00 : f32
    %11 = vector.broadcast %cst_7 : f32 to vector<8x64xf32>
    %12 = arith.addf %11, %10 : vector<8x64xf32>
    %13 = arith.divf %11, %12 : vector<8x64xf32>
    %14 = vector.extract_strided_slice %13 {offsets = [0, 0], sizes = [8, 32], strides = [1, 1]} : vector<8x64xf32> to vector<8x32xf32>
    %15 = vector.extract_strided_slice %13 {offsets = [0, 32], sizes = [8, 32], strides = [1, 1]} : vector<8x64xf32> to vector<8x32xf32>
    %16 = vector.extract_strided_slice %7 {offsets = [0, 64], sizes = [8, 32], strides = [1, 1]} : vector<8x128xf32> to vector<8x32xf32>
    %17 = vector.extract_strided_slice %7 {offsets = [0, 96], sizes = [8, 32], strides = [1, 1]} : vector<8x128xf32> to vector<8x32xf32>
    %18 = arith.mulf %15, %17 : vector<8x32xf32>
    %19 = arith.addf %16, %18 : vector<8x32xf32>
    %20 = math.tanh %19 : vector<8x32xf32>
    %cst_8 = arith.constant 1.000000e+00 : f32
    %21 = vector.broadcast %cst_8 : f32 to vector<8x32xf32>
    %22 = arith.subf %21, %14 : vector<8x32xf32>
    %23 = arith.mulf %22, %1 : vector<8x32xf32>
    %24 = arith.mulf %14, %20 : vector<8x32xf32>
    %25 = arith.addf %23, %24 : vector<8x32xf32>
    %c0_9 = arith.constant 0 : index
    %c0_10 = arith.constant 0 : index
    %26 = vector.load %arg4[%c0_9, %c0_10] : memref<8x32xf32, #tpu.memory_space<vmem>>, vector<8x32xf32>
    tpu.vector_store %arg4[%c0_9, %c0_10], %25 {strides = array<i32>} : memref<8x32xf32, #tpu.memory_space<vmem>>, vector<8x32xf32>,
    return
  }
}

</mosaic_0001>

<bundles_post_ra>
// kernel: tpu_custom_call.1
= control target key start
LH: loop header
LB: loop body
LE: loop exit
PB: predicated region body
PF: predicated region fallthrough
CT: control target
= control target key end

     0   :  { %9 = vsyncpa [#allocation3], 0  ;;  %s333_s0 = inlined_call_operand.hbm [shape: f32[8,32], index: 0, kind: input, shape index: {}]   ;;  %s334_s1 = inlined_call_operand.hbm [shape: f32[8,32], index: 1, kind: input, shape index: {}]   ;;  %s335_s2 = inlined_call_operand.hbm [shape: f32[64,128], index: 2, kind: input, shape index: {}]   ;;  %s336_s3 = inlined_call_operand.vmem [shape: f32[1,128], index: 3, kind: input, shape index: {}]   ;;  %s337_s4 = inlined_call_operand.hbm [shape: f32[8,32], index: 4, kind: output, shape index: {}]  }
   0x1   :  { %10 = vsyncpa [#allocation6], 0  ;;  %s28_s17 = sshll.u32 %s334_s1, 4  ;;  %s29_s17 = int_to_ptr.hbm [resolvable:$true] %s28_s17 }
   0x2   :  { %11 = vsyncpa [#allocation4], 0  ;;  %s281_s18 = smov [#allocation5]   ;;  %s17_s22 = sshll.u32 %s333_s0, 4  ;;  %s18_s22 = int_to_ptr.hbm [resolvable:$true] %s17_s22 }
   0x3   :  { %s30_s19 = sshll.u32 %s281_s18, 4  ;;  %s282_s23 = smov [#allocation2]   ;;  %s31_s19 = int_to_ptr.vmem [resolvable:$true] %s30_s19 }
   0x4   :  { %33 = dma.hbm_to_vmem [thread:$0]  %s29_s17, 128, %s31_s19, [#allocation6]  }
   0x5   :  { %s19_s24 = sshll.u32 %s282_s23, 4  ;;  %s38_s27 = sshll.u32 %s335_s2, 4  ;;  %s20_s24 = int_to_ptr.vmem [resolvable:$true] %s19_s24  ;;  %s39_s27 = int_to_ptr.hbm [resolvable:$true] %s38_s27 }
   0x6   :  { %22 = dma.hbm_to_vmem [thread:$0]  %s18_s22, 128, %s20_s24, [#allocation3]  }
   0x7   :  { %s283_s1 = smov [#allocation7]   ;;  %s284_s29 = smov 128  }
   0x8   :  { %s40_s28 = sshll.u32 %s283_s1, 4  ;;  %s285_s30 = smov 8   ;;  %s41_s28 = int_to_ptr.vmem [resolvable:$true] %s40_s28 }
   0x9   :  { %46 = dma.hbm_to_vmem [thread:$0]  %s39_s27, 1024, %s41_s28, [#allocation6], %s284_s29, %s284_s29, %s285_s30  }
   0xa   :  { %275 = dma.done.wait [#allocation3], 128  }
   0xb   :  { %276 = vsyncadd [#allocation3], 4294967168 }
   0xc   :  { %277 = dma.done.wait [#allocation6], 1152  }
   0xd   :  { %278 = vsyncadd [#allocation6], 4294966144  ;;  %v62_v0 = vld [vmem:[#allocation5] sm:$0xff]  ;;  %v75_v2 = vld [vmem:[#allocation7 + $0x30] sm:$0xff]  ;;  %s286_s0 = smov 32   ;;  %vm67_vm0 = vcmask 261120  }
   0xe   :  { %v76_v1 = vld [vmem:[#allocation7 + $0x38] sm:$0xff]  ;;  %64 = vrot.lane.b32.xlu0 %v62_v0, %s286_s0  ;;  %v74_v3 = vld [vmem:[#allocation7 + $0x28] sm:$0xff]  ;;  %v73_v4 = vld [vmem:[#allocation7 + $0x20] sm:$0xff]  ;;  %vm81_vm1 = vcmask 523264   ;;  %s287_s6 = smov 64   ;;  %s151_s10 = sshll.u32 %s337_s4, 4  ;;  %s152_s10 = int_to_ptr.hbm [resolvable:$true] %s151_s10 }
   0xf   :  { %93 = vmatpush.msra.mxu0 %v76_v1  ;;  %v72_v5 = vld [vmem:[#allocation7 + $0x18] sm:$0xff]  ;;  %v71_v6 = vld [vmem:[#allocation7 + $0x10] sm:$0xff]  ;;  %v70_v7 = vld [vmem:[#allocation7 + $0x8] sm:$0xff] }
  0x10   :  { %v69_v8 = vld [vmem:[#allocation7] sm:$0xff]  ;;  %v61_v9 = vld [vmem:[#allocation2] sm:$0xff] }
  0x11   :  { %94 = vmatpush.msra.mxu0 %v75_v2  ;;  %v172_v12 = vld [vmem:[%s336_s3] ss:$0 sm:$0xff]  ;;  %s288_s3 = smov [#allocation8]  }
  0x12   :  { %s149_s7 = sshll.u32 %s288_s3, 4  ;;  %s150_s7 = int_to_ptr.vmem [resolvable:$true] %s149_s7 }
  0x13   :  { %95 = vmatpush.msra.mxu0 %v74_v3 }
  0x15   :  { %96 = vmatpush.msra.mxu0 %v73_v4 }
  0x17   :  { %97 = vmatpush.msra.mxu0 %v72_v5 }
  0x19   :  { %98 = vmatpush.msra.mxu0 %v71_v6 }
  0x1b   :  { %99 = vmatpush.msra.mxu0 %v70_v7 }
  0x1d   :  { %100 = vmatpush.msra.mxu0 %v69_v8 }
  0x80   :  { %v65_v10 = vpop.permute.xlu0 %64 }
  0x81   :  { %v68_v11 = vsel %vm67_vm0, %v61_v9, %v65_v10 }
  0x82   :  { %162 = vmatmul.msk.f32.vlgmr.msra.gmra.mxu0 %vm81_vm1, %v68_v11 }
  0xff   :  { %v102_v13 = vpop.f32.mrf.mxu0 }
 0x100   :  { %v103_v14 = vadd.f32 %v172_v12, %v102_v13 }
 0x102   :  { %125 = vrot.lane.b32.xlu0 %v103_v14, %s287_s6  ;;  %v163_v15 = vmul.f32 -1.442695, %v103_v14 }
 0x104   :  { %173 = vpow2.f32 %v163_v15 }
 0x10a   :  { %v174_v16 = vpop.eup %173 }
 0x10b   :  { %v108_v17 = vadd.f32 1.0, %v174_v16 }
 0x10d   :  { %175 = vrcp.f32 %v108_v17  ;;  %v120_v23 = vand.u32 2147483648, %v108_v17  ;;  %vm114_vm3 = vweird.f32 %v108_v17  ;;  %v118_v24 = vand.u32 2147483647, %v108_v17 }
 0x10f   :  { %v121_v26 = vor.u32 1.1754944e-38, %v120_v23  ;;  %vm119_vm5 = vcmp.eq.f32.partialorder %v118_v24, 8.507059e+37 }
 0x113   :  { %v176_v18 = vpop.eup %175 }
 0x114   :  { %v110_v19 = vmul.f32 %v176_v18, %v108_v17  ;;  %vm115_vm2 = vweird.f32 %v176_v18 }
 0x115   :  { %vm116_vm4 = vmor %vm114_vm3, %vm115_vm2 }
 0x116   :  { %v111_v20 = vsub.f32 1.0, %v110_v19 }
 0x118   :  { %v112_v21 = vmul.f32 %v176_v18, %v111_v20 }
 0x11a   :  { %v113_v22 = vadd.f32 %v176_v18, %v112_v21 }
 0x11c   :  { %v117_v25 = vsel %vm116_vm4, %v176_v18, %v113_v22 }
 0x11d   :  { %v122_v28 = vsel %vm119_vm5, %v121_v26, %v117_v25 }
 0x11e   :  { %v135_v33 = vsub.f32 1.0, %v122_v28 }
 0x120   :  { %v136_v35 = vmul.f32 %v135_v33, %v62_v0 }
 0x174   :  { %v126_v27 = vpop.permute.xlu0 %125 }
 0x175   :  { %v128_v29 = vmul.f32 %v126_v27, %v122_v28 }
 0x177   :  { %130 = vrot.lane.b32.xlu1 %v128_v29, %s286_s0 }
 0x1e9   :  { %v131_v30 = vpop.permute.xlu1 %130 }
 0x1ea   :  { %v133_v31 = vadd.f32 %v131_v30, %v103_v14 }
 0x1ec   :  { %177 = vtanh.f32 %v133_v31 }
 0x1f2   :  { %v178_v32 = vpop.eup %177 }
 0x1f3   :  { %138 = vrot.lane.b32.xlu1 %v178_v32, %s287_s6 }
 0x265   :  { %v139_v34 = vpop.permute.xlu1 %138 }
 0x266   :  { %v141_v36 = vmul.f32 %v139_v34, %v122_v28 }
 0x268   :  { %v142_v37 = vadd.f32 %v141_v36, %v136_v35 }
 0x26a   :  { %143 = vst.msk [vmem:[#allocation8] sm:$0xff] %vm67_vm0, %v142_v37 }
 0x26b   :  { %154 = dma.vmem_to_hbm [thread:$0]  %s150_s7, 128, %s152_s10, [#allocation4]  }
 0x26c   :  { %279 = dma.done.wait [#allocation4], 128  }
 0x26d   :  { %280 = vsyncadd [#allocation4], 4294967168 }
 0x26e   :  { %159 = vsyncpa [#allocation3], 1 }
 0x26f   :  { %160 = vsyncpa [#allocation6], 1 }
 0x270   :  { %161 = vsyncpa [#allocation4], 1 }

</bundles_post_ra>
